<compile_context>
chip_gen: v7x
topology: tpu7x:2x2x1
jax: 0.10.0
libtpu: 0.0.40
codegen_flags: <defaults>
</compile_context>

<pallas_src>
import functools

import jax
import jax.numpy as jnp
from jax import lax
from jax.experimental import pallas as pl
from jax.experimental.pallas import tpu as pltpu

_LANE = 128
_SUBLANE = 8
_STATS_W = 128          # width of the packed (likelihood, label) output slab
_PAD_PENALTY = 1e30     # added to dist of padded (fake) classes so argmin never picks them


def _round_up(x, m):
    return (x + m - 1) // m * m


def _acl_kernel(feat_ref, noise_ref, params_t_ref,
                logits_ref, tsamp_ref, stats_ref, *, num_classes):
    """One batch tile of the AdversarialContrastiveLoss forward.

    Layouts (all lane-dense, zero padded):
      feat, noise        : (TB, Dp)
      params_t           : (2*Dp, Cp)  -- rows [0:Dp] = centers^T, rows [Dp:2Dp] = log_covs^T
      logits             : (TB, Cp)
      tsampled           : (TB, Dp)
      stats              : (TB, 128)   -- col 0 = likelihood, col 1 = label (as f32)
    """
    feat = feat_ref[...]            # (TB, Dp) f32
    noise = noise_ref[...]          # (TB, Dp) f32
    params = params_t_ref[...]      # (2*Dp, Cp) f32

    TB, Dp = feat.shape
    Cp = params.shape[1]

    # 128-aligned static sublane slices: no (8,128) tile crossing, no VMEM copy.
    c_t = params[:Dp, :]            # centers^T   (Dp, Cp)
    lc_t = params[Dp:, :]           # log_covs^T  (Dp, Cp)

    # Per-class quantities: exp on the EUP, sublane reductions give (1, Cp) directly.
    inv_t = jnp.exp(-lc_t)                                     # 1/cov          (Dp, Cp)
    wc_t = c_t * inv_t                                         # mu/cov         (Dp, Cp)
    slog = jnp.sum(lc_t, axis=0, keepdims=True)                # sum_d logcov   (1, Cp)
    c_const = jnp.sum(c_t * wc_t, axis=0, keepdims=True)       # sum_d mu^2/cov (1, Cp)

    # dist[b,c] = sum_d (f-mu)^2 / cov == f^2 @ inv - 2 f @ (mu*inv) + sum_d mu^2*inv  (MXU)
    t1 = jnp.dot(feat * feat, inv_t, preferred_element_type=jnp.float32)   # (TB, Cp)
    t2 = jnp.dot(feat, wc_t, preferred_element_type=jnp.float32)           # (TB, Cp)

    cidx = lax.broadcasted_iota(jnp.int32, (TB, Cp), 1)
    pad_pen = jnp.where(cidx >= num_classes,
                        jnp.float32(_PAD_PENALTY), jnp.float32(0.0))

    dist = (t1 - 2.0 * t2) + (c_const + pad_pen)               # (TB, Cp)
    logits = -0.5 * (slog + dist)                              # (TB, Cp)
    logits_ref[...] = logits

    # label = argmin(dist, axis=-1), first occurrence on ties (like torch.argmin).
    min_d = jnp.min(dist, axis=-1, keepdims=True)              # (TB, 1)
    label = jnp.min(jnp.where(dist == min_d, cidx, Cp),
                    axis=-1, keepdims=True)                    # (TB, 1) int32
    onehot = (cidx == label).astype(jnp.float32)               # (TB, Cp)

    # Gather centers[label] and log_covs[label] with ONE one-hot matmul over the stacked
    # class-param block: (TB, Cp) x (Cp, 2*Dp) -> (TB, 2*Dp).
    dn = (((1,), (1,)), ((), ()))
    sel_both = lax.dot_general(onehot, params, dn,
                               preferred_element_type=jnp.float32)     # (TB, 2*Dp)
    sel_center = sel_both[:, :Dp]                              # centers[label]  (TB, Dp)
    sel_logcov = sel_both[:, Dp:]                              # log_covs[label] (TB, Dp)

    # Tsampled = noise * sqrt(exp(log_covs[label])) + centers[label]
    #          = noise * exp(0.5 * log_covs[label]) + centers[label]   (single EUP exp)
    tsamp_ref[...] = noise * jnp.exp(0.5 * sel_logcov) + sel_center

    # likelihood = -logits[b, label] = 0.5 * (slog[label] + dist[b, label])
    #   slog[label] = sum_d sel_logcov (padded D columns are zero); dist[b, label] = min_d.
    sel_slog = jnp.sum(sel_logcov, axis=-1, keepdims=True)     # (TB, 1)
    likelihood = 0.5 * (sel_slog + min_d)                      # (TB, 1)

    # Pack the two per-row scalars into one lane-dense 128-wide slab (no masked 1-lane stores).
    lane = lax.broadcasted_iota(jnp.int32, (TB, _STATS_W), 1)
    stats_ref[...] = (jnp.where(lane == 0, likelihood, 0.0)
                      + jnp.where(lane == 1, label.astype(jnp.float32), 0.0))


def adversarial_contrastive_loss(feat, centers, log_covs, noise):
    """Forward pass matching the PyTorch module with label=None.

    Returns (logits, Treal, Tsampled, likelihood, label); Treal == feat
    (.detach()/.cuda() are no-ops in a pure forward). label is returned as an extra output.
    """
    B, D = feat.shape
    C = centers.shape[0]

    Dp = _round_up(D, _LANE)
    Cp = _round_up(C, _LANE)
    TB = _LANE if B >= _LANE else _round_up(B, _SUBLANE)
    Bp = _round_up(B, TB)
    grid = (Bp // TB,)

    f32 = jnp.float32
    feat_p = jnp.pad(feat.astype(f32), ((0, Bp - B), (0, Dp - D)))
    noise_p = jnp.pad(noise.astype(f32), ((0, Bp - B), (0, Dp - D)))
    # Layout plumbing: class axis goes to lanes -> (Dp, Cp) transposed, zero padded; then
    # centers^T and log_covs^T are stacked along the sublane axis into one resident block.
    centers_t = jnp.pad(centers.astype(f32).T, ((0, Dp - D), (0, Cp - C)))
    logcov_t = jnp.pad(log_covs.astype(f32).T, ((0, Dp - D), (0, Cp - C)))
    params_t = jnp.concatenate([centers_t, logcov_t], axis=0)          # (2*Dp, Cp)

    out_shape = (
        jax.ShapeDtypeStruct((Bp, Cp), f32),          # logits (padded)
        jax.ShapeDtypeStruct((Bp, Dp), f32),          # Tsampled (padded)
        jax.ShapeDtypeStruct((Bp, _STATS_W), f32),    # packed likelihood / label
    )

    cost = pl.CostEstimate(
        flops=8 * Bp * Dp * Cp,                         # 2 dist matmuls + 2*Dp-wide gather
        transcendentals=grid[0] * Dp * Cp + Bp * Dp,    # exp(-logcov) per tile + exp(.5*sel)
        bytes_accessed=4 * (3 * Bp * Dp + 2 * Dp * Cp + Bp * Cp + Bp * _STATS_W),
    )

    logits_p, tsamp_p, stats = pl.pallas_call(
        functools.partial(_acl_kernel, num_classes=C),
        out_shape=out_shape,
        grid=grid,
        in_specs=[
            pl.BlockSpec((TB, Dp), lambda i: (i, 0)),
            pl.BlockSpec((TB, Dp), lambda i: (i, 0)),
            pl.BlockSpec((2 * Dp, Cp), lambda i: (0, 0)),   # resident across batch tiles
        ],
        out_specs=(
            pl.BlockSpec((TB, Cp), lambda i: (i, 0)),
            pl.BlockSpec((TB, Dp), lambda i: (i, 0)),
            pl.BlockSpec((TB, _STATS_W), lambda i: (i, 0)),
        ),
        compiler_params=pltpu.CompilerParams(
            dimension_semantics=("parallel",),          # shard batch tiles across TCs (v7x)
        ),
        cost_estimate=cost,
    )(feat_p, noise_p, params_t)

    logits = logits_p[:B, :C]
    tsampled = tsamp_p[:B, :D]
    likelihood = stats[:B, 0]
    label = stats[:B, 1].astype(jnp.int32)
    treal = feat
    return logits, treal, tsampled, likelihood, label


def _reference(feat, centers, log_covs, noise):
    # Plain-JAX reference mirroring the PyTorch forward (label=None path).
    covs = jnp.exp(log_covs)
    diff = feat[:, None, :] - centers[None, :, :]
    dist = jnp.sum(diff * (diff / covs[None]), axis=-1)
    slog = jnp.sum(log_covs, axis=-1)
    logits = -0.5 * (slog[None, :] + dist)
    label = jnp.argmin(dist, axis=-1)
    tsampled = noise * jnp.sqrt(jnp.exp(log_covs[label])) + centers[label]
    likelihood = -logits[jnp.arange(feat.shape[0]), label]
    return logits, feat, tsampled, likelihood, label


if __name__ == "__main__":
    # Module config (synthetic, deterministic init — NOT a checkpoint load)
    num_classes = 16
    feat_dim = 32
    alpha = 0.1  # NOTE: alpha is unused in the module's forward pass
    batch = 8

    key = jax.random.PRNGKey(0)
    k_feat, k_centers, k_noise = jax.random.split(key, 3)

    feat = jax.random.normal(k_feat, (batch, feat_dim), dtype=jnp.float32)
    centers = jax.random.normal(k_centers, (num_classes, feat_dim), dtype=jnp.float32)
    log_covs = jnp.zeros((num_classes, feat_dim), dtype=jnp.float32)
    # torch.Tensor(...).normal_() uses the CUDA RNG; the standard-normal noise is generated
    # deterministically in JAX and fed to the kernel so results are reproducible.
    # TODO(synk): optionally switch to in-kernel pltpu.prng_seed/stateful_normal at large B
    # (saves one input DMA stream) — changes the RNG stream, so kept external here.
    noise = jax.random.normal(k_noise, (batch, feat_dim), dtype=jnp.float32)

    logits, treal, tsampled, likelihood, label = adversarial_contrastive_loss(
        feat, centers, log_covs, noise)
    jax.block_until_ready((logits, treal, tsampled, likelihood, label))

    # sanity check against plain-JAX reference
    r_logits, r_treal, r_tsampled, r_lik, r_label = _reference(
        feat, centers, log_covs, noise)
    assert jnp.allclose(logits, r_logits, atol=1e-3, rtol=1e-4)
    assert jnp.allclose(treal, r_treal)
    assert jnp.array_equal(label, r_label)
    assert jnp.allclose(tsampled, r_tsampled, atol=1e-3, rtol=1e-4)
    assert jnp.allclose(likelihood, r_lik, atol=1e-3, rtol=1e-4)

    print("KERNEL_OK")
</pallas_src>

<mosaic_0001>
module attributes {stable_mosaic.version = 11 : i64} {
  func.func @_acl_kernel(%arg0: i32, %arg1: memref<8x128xf32, #tpu.memory_space<vmem>>, %arg2: memref<8x128xf32, #tpu.memory_space<vmem>>, %arg3: memref<256x128xf32, #tpu.memory_space<vmem>>, %arg4: memref<8x128xf32, #tpu.memory_space<vmem>>, %arg5: memref<8x128xf32, #tpu.memory_space<vmem>>, %arg6: memref<8x128xf32, #tpu.memory_space<vmem>>) attributes {dimension_semantics = [#tpu.dimension_semantics<parallel>], iteration_bounds = array<i64: 1>, scalar_prefetch = 0 : i64, scratch_operands = 0 : i64, tpu.core_type = #tpu.core_type<tc>, window_params = [{transform_indices = @transform_0, window_bounds = array<i64: 8, 128>}, {transform_indices = @transform_1, window_bounds = array<i64: 8, 128>}, {pipeline_mode = #tpu.pipeline_mode<synchronous>, transform_indices = @transform_2, window_bounds = array<i64: 256, 128>}, {transform_indices = @transform_3, window_bounds = array<i64: 8, 128>}, {transform_indices = @transform_4, window_bounds = array<i64: 8, 128>}, {transform_indices = @transform_5, window_bounds = array<i64: 8, 128>}]} {
    %c0 = arith.constant 0 : index
    %c0_0 = arith.constant 0 : index
    %0 = vector.load %arg1[%c0, %c0_0] : memref<8x128xf32, #tpu.memory_space<vmem>>, vector<8x128xf32>
    %c0_1 = arith.constant 0 : index
    %c0_2 = arith.constant 0 : index
    %1 = vector.load %arg2[%c0_1, %c0_2] : memref<8x128xf32, #tpu.memory_space<vmem>>, vector<8x128xf32>
    %c0_3 = arith.constant 0 : index
    %c0_4 = arith.constant 0 : index
    %2 = vector.load %arg3[%c0_3, %c0_4] : memref<256x128xf32, #tpu.memory_space<vmem>>, vector<256x128xf32>
    %3 = vector.extract_strided_slice %2 {offsets = [0, 0], sizes = [128, 128], strides = [1, 1]} : vector<256x128xf32> to vector<128x128xf32>
    %4 = vector.extract_strided_slice %2 {offsets = [128, 0], sizes = [128, 128], strides = [1, 1]} : vector<256x128xf32> to vector<128x128xf32>
    %cst = arith.constant 0.000000e+00 : f32
    %5 = vector.broadcast %cst : f32 to vector<128x128xf32>
    %6 = arith.subf %5, %4 : vector<128x128xf32>
    %7 = math.exp %6 : vector<128x128xf32>
    %8 = arith.mulf %3, %7 : vector<128x128xf32>
    %cst_5 = arith.constant dense<0.000000e+00> : vector<128xf32>
    %9 = vector.multi_reduction <add>, %4, %cst_5 [0] : vector<128x128xf32> to vector<128xf32>
    %10 = vector.shape_cast %9 : vector<128xf32> to vector<1x128xf32>
    %11 = arith.mulf %3, %8 : vector<128x128xf32>
    %cst_6 = arith.constant dense<0.000000e+00> : vector<128xf32>
    %12 = vector.multi_reduction <add>, %11, %cst_6 [0] : vector<128x128xf32> to vector<128xf32>
    %13 = vector.shape_cast %12 : vector<128xf32> to vector<1x128xf32>
    %14 = arith.mulf %0, %0 : vector<8x128xf32>
    %cst_7 = arith.constant dense<0.000000e+00> : vector<8x128xf32>
    %15 = tpu.matmul %14, %7, %cst_7 {dimension_numbers = #tpu.dot_dimension_numbers<[1], [0], [0], [1], [0, 0, 1, 1], [], []>} : vector<8x128xf32>, vector<128x128xf32>, vector<8x128xf32> -> vector<8x128xf32>
    %cst_8 = arith.constant dense<0.000000e+00> : vector<8x128xf32>
    %16 = tpu.matmul %0, %8, %cst_8 {dimension_numbers = #tpu.dot_dimension_numbers<[1], [0], [0], [1], [0, 0, 1, 1], [], []>} : vector<8x128xf32>, vector<128x128xf32>, vector<8x128xf32> -> vector<8x128xf32>
    %17 = tpu.iota {dimensions = array<i32: 1>} : vector<8x128xi32>
    %c16_i32 = arith.constant 16 : i32
    %18 = vector.broadcast %c16_i32 : i32 to vector<8x128xi32>
    %19 = arith.cmpi sge, %17, %18 : vector<8x128xi32>
    %cst_9 = arith.constant 1.000000e+30 : f32
    %cst_10 = arith.constant 0.000000e+00 : f32
    %20 = vector.broadcast %cst_9 : f32 to vector<8x128xf32>
    %21 = vector.broadcast %cst_10 : f32 to vector<8x128xf32>
    %22 = arith.select %19, %20, %21 : vector<8x128xi1>, vector<8x128xf32>
    %cst_11 = arith.constant 2.000000e+00 : f32
    %23 = vector.broadcast %cst_11 : f32 to vector<8x128xf32>
    %24 = arith.mulf %23, %16 : vector<8x128xf32>
    %25 = arith.subf %15, %24 : vector<8x128xf32>
    %26 = vector.broadcast %13 : vector<1x128xf32> to vector<8x128xf32>
    %27 = arith.addf %26, %22 : vector<8x128xf32>
    %28 = arith.addf %25, %27 : vector<8x128xf32>
    %29 = vector.broadcast %10 : vector<1x128xf32> to vector<8x128xf32>
    %30 = arith.addf %29, %28 : vector<8x128xf32>
    %cst_12 = arith.constant -5.000000e-01 : f32
    %31 = vector.broadcast %cst_12 : f32 to vector<8x128xf32>
    %32 = arith.mulf %31, %30 : vector<8x128xf32>
    %c0_13 = arith.constant 0 : index
    %c0_14 = arith.constant 0 : index
    %33 = vector.load %arg4[%c0_13, %c0_14] : memref<8x128xf32, #tpu.memory_space<vmem>>, vector<8x128xf32>
    tpu.vector_store %arg4[%c0_13, %c0_14], %32 {strides = array<i32>} : memref<8x128xf32, #tpu.memory_space<vmem>>, vector<8x128xf32>,
    %cst_15 = arith.constant dense<0x7F800000> : vector<8xf32>
    %34 = vector.multi_reduction <minimumf>, %28, %cst_15 [1] : vector<8x128xf32> to vector<8xf32>
    %35 = vector.shape_cast %34 : vector<8xf32> to vector<8x1xf32>
    %36 = vector.broadcast %35 : vector<8x1xf32> to vector<8x128xf32>
    %37 = arith.cmpf oeq, %28, %36 : vector<8x128xf32>
    %c128_i32 = arith.constant 128 : i32
    %38 = vector.broadcast %c128_i32 : i32 to vector<8x128xi32>
    %39 = arith.select %37, %17, %38 : vector<8x128xi1>, vector<8x128xi32>
    %cst_16 = arith.constant dense<2147483647> : vector<8xi32>
    %40 = vector.multi_reduction <minsi>, %39, %cst_16 [1] : vector<8x128xi32> to vector<8xi32>
    %41 = vector.shape_cast %40 : vector<8xi32> to vector<8x1xi32>
    %42 = vector.broadcast %41 : vector<8x1xi32> to vector<8x128xi32>
    %43 = arith.cmpi eq, %17, %42 : vector<8x128xi32>
    %44 = arith.extui %43 : vector<8x128xi1> to vector<8x128xi32>
    %45 = arith.sitofp %44 : vector<8x128xi32> to vector<8x128xf32>
    %cst_17 = arith.constant dense<0.000000e+00> : vector<8x256xf32>
    %46 = tpu.matmul %45, %2, %cst_17 {dimension_numbers = #tpu.dot_dimension_numbers<[1], [1], [0], [0], [0, 0, 1, 0], [], []>} : vector<8x128xf32>, vector<256x128xf32>, vector<8x256xf32> -> vector<8x256xf32>
    %47 = vector.extract_strided_slice %46 {offsets = [0, 0], sizes = [8, 128], strides = [1, 1]} : vector<8x256xf32> to vector<8x128xf32>
    %48 = vector.extract_strided_slice %46 {offsets = [0, 128], sizes = [8, 128], strides = [1, 1]} : vector<8x256xf32> to vector<8x128xf32>
    %cst_18 = arith.constant 5.000000e-01 : f32
    %49 = vector.broadcast %cst_18 : f32 to vector<8x128xf32>
    %50 = arith.mulf %49, %48 : vector<8x128xf32>
    %51 = math.exp %50 : vector<8x128xf32>
    %52 = arith.mulf %1, %51 : vector<8x128xf32>
    %53 = arith.addf %52, %47 : vector<8x128xf32>
    %c0_19 = arith.constant 0 : index
    %c0_20 = arith.constant 0 : index
    %54 = vector.load %arg5[%c0_19, %c0_20] : memref<8x128xf32, #tpu.memory_space<vmem>>, vector<8x128xf32>
    tpu.vector_store %arg5[%c0_19, %c0_20], %53 {strides = array<i32>} : memref<8x128xf32, #tpu.memory_space<vmem>>, vector<8x128xf32>,
    %cst_21 = arith.constant dense<0.000000e+00> : vector<8xf32>
    %55 = vector.multi_reduction <add>, %48, %cst_21 [1] : vector<8x128xf32> to vector<8xf32>
    %56 = vector.shape_cast %55 : vector<8xf32> to vector<8x1xf32>
    %57 = arith.addf %56, %35 : vector<8x1xf32>
    %cst_22 = arith.constant 5.000000e-01 : f32
    %58 = vector.broadcast %cst_22 : f32 to vector<8x1xf32>
    %59 = arith.mulf %58, %57 : vector<8x1xf32>
    %60 = tpu.iota {dimensions = array<i32: 1>} : vector<8x128xi32>
    %c0_i32 = arith.constant 0 : i32
    %61 = vector.broadcast %c0_i32 : i32 to vector<8x128xi32>
    %62 = arith.cmpi eq, %60, %61 : vector<8x128xi32>
    %cst_23 = arith.constant 0.000000e+00 : f32
    %63 = vector.shape_cast %59 : vector<8x1xf32> to vector<8x1xf32>
    %64 = vector.broadcast %63 : vector<8x1xf32> to vector<8x128xf32>
    %65 = vector.broadcast %cst_23 : f32 to vector<8x128xf32>
    %66 = arith.select %62, %64, %65 : vector<8x128xi1>, vector<8x128xf32>
    %c1_i32 = arith.constant 1 : i32
    %67 = vector.broadcast %c1_i32 : i32 to vector<8x128xi32>
    %68 = arith.cmpi eq, %60, %67 : vector<8x128xi32>
    %69 = arith.sitofp %41 : vector<8x1xi32> to vector<8x1xf32>
    %cst_24 = arith.constant 0.000000e+00 : f32
    %70 = vector.shape_cast %69 : vector<8x1xf32> to vector<8x1xf32>
    %71 = vector.broadcast %70 : vector<8x1xf32> to vector<8x128xf32>
    %72 = vector.broadcast %cst_24 : f32 to vector<8x128xf32>
    %73 = arith.select %68, %71, %72 : vector<8x128xi1>, vector<8x128xf32>
    %74 = arith.addf %66, %73 : vector<8x128xf32>
    %c0_25 = arith.constant 0 : index
    %c0_26 = arith.constant 0 : index
    %75 = vector.load %arg6[%c0_25, %c0_26] : memref<8x128xf32, #tpu.memory_space<vmem>>, vector<8x128xf32>
    tpu.vector_store %arg6[%c0_25, %c0_26], %74 {strides = array<i32>} : memref<8x128xf32, #tpu.memory_space<vmem>>, vector<8x128xf32>,
    return
  }
  func.func @transform_0(%arg0: i32) -> (i32, i32) {
    %c0_i32 = arith.constant 0 : i32
    %c0_i32_0 = arith.constant 0 : i32
    return %arg0, %c0_i32 : i32, i32
  }
  func.func @transform_1(%arg0: i32) -> (i32, i32) {
    %c0_i32 = arith.constant 0 : i32
    %c0_i32_0 = arith.constant 0 : i32
    return %arg0, %c0_i32 : i32, i32
  }
  func.func @transform_2(%arg0: i32) -> (i32, i32) {
    %c0_i32 = arith.constant 0 : i32
    %c0_i32_0 = arith.constant 0 : i32
    %c0_i32_1 = arith.constant 0 : i32
    return %c0_i32, %c0_i32_0 : i32, i32
  }
  func.func @transform_3(%arg0: i32) -> (i32, i32) {
    %c0_i32 = arith.constant 0 : i32
    %c0_i32_0 = arith.constant 0 : i32
    return %arg0, %c0_i32 : i32, i32
  }
  func.func @transform_4(%arg0: i32) -> (i32, i32) {
    %c0_i32 = arith.constant 0 : i32
    %c0_i32_0 = arith.constant 0 : i32
    return %arg0, %c0_i32 : i32, i32
  }
  func.func @transform_5(%arg0: i32) -> (i32, i32) {
    %c0_i32 = arith.constant 0 : i32
    %c0_i32_0 = arith.constant 0 : i32
    return %arg0, %c0_i32 : i32, i32
  }
}

</mosaic_0001>

<bundles_post_ra>
// kernel: tpu_custom_call.1
= control target key start
LH: loop header
LB: loop body
LE: loop exit
PB: predicated region body
PF: predicated region fallthrough
CT: control target
= control target key end

     0   :  { %11 = vsyncpa [#allocation3], 0  ;;  %s1276_s0 = inlined_call_operand.hbm [shape: f32[8,128], index: 0, kind: input, shape index: {}]   ;;  %s1277_s1 = inlined_call_operand.hbm [shape: f32[8,128], index: 1, kind: input, shape index: {}]   ;;  %s1278_s2 = inlined_call_operand.hbm [shape: f32[256,128], index: 2, kind: input, shape index: {}]   ;;  %s1279_s3 = inlined_call_operand.hbm [shape: f32[8,128], index: 3, kind: output, shape index: {0}]   ;;  %s1280_s4 = inlined_call_operand.hbm [shape: f32[8,128], index: 4, kind: output, shape index: {1}]   ;;  %s1281_s5 = inlined_call_operand.hbm [shape: f32[8,128], index: 5, kind: output, shape index: {2}]  }
   0x1   :  { %12 = vsyncpa [#allocation6], 0 }
   0x2   :  { %13 = vsyncpa [#allocation4], 0 }
   0x3   :  { %14 = vsyncpa [#allocation10], 0  ;;  %s922_s18 = smov [#allocation5]   ;;  %s923_s20 = smov [#allocation2]  }
   0x4   :  { %s31_s19 = sshll.u32 %s922_s18, 4  ;;  %s21_s21 = sshll.u32 %s923_s20, 4  ;;  %s32_s19 = int_to_ptr.vmem [resolvable:$true] %s31_s19  ;;  %s22_s21 = int_to_ptr.vmem [resolvable:$true] %s21_s21 }
   0x5   :  { %s782_s24 = scalar_lea.hbm %s1277_s1, 128 }
   0x6   :  { %p783_p0 = scmp.ne.s32.totalorder %s1277_s1, %s782_s24  ;;  %p786_p1 = scmp.lt.u32.totalorder %s782_s24, %s1277_s1 }
   0x8   :  { %p788_p2 = pnand %p786_p1, %p783_p0 }
   0xa   :  { %791 = shalt.err (!%p788_p2)
}
   0xb   :  { %s792_s29 = scalar_lea.vmem %s32_s19, 128  ;;  %p797_p4 = scmp.lt.s32.totalorder %s32_s19, %s32_s19 }
   0xc   :  { %p793_p3 = scmp.ne.s32.totalorder %s32_s19, %s792_s29  ;;  %p798_p5 = scmp.lt.s32.totalorder %s792_s29, %s792_s29 }
   0xe   :  { %p799_p6 = por %p798_p5, %p797_p4 }
  0x10   :  { %p800_p7 = pnand %p799_p6, %p793_p3 }
  0x12   :  { %803 = shalt.err (!%p800_p7)
}
  0x13   :  { %34 = dma.hbm_to_vmem [thread:$0]  %s1277_s1, 128, %s32_s19, [#allocation6]  }
  0x14   :  { %s804_s9 = scalar_lea.hbm %s1276_s0, 128 }
  0x15   :  { %p805_p8 = scmp.ne.s32.totalorder %s1276_s0, %s804_s9  ;;  %p808_p9 = scmp.lt.u32.totalorder %s804_s9, %s1276_s0 }
  0x17   :  { %p810_p10 = pnand %p808_p9, %p805_p8 }
  0x19   :  { %813 = shalt.err (!%p810_p10)
}
  0x1a   :  { %s814_s14 = scalar_lea.vmem %s22_s21, 128  ;;  %p819_p12 = scmp.lt.s32.totalorder %s22_s21, %s22_s21 }
  0x1b   :  { %p815_p11 = scmp.ne.s32.totalorder %s22_s21, %s814_s14  ;;  %p820_p13 = scmp.lt.s32.totalorder %s814_s14, %s814_s14 }
  0x1d   :  { %p821_p0 = por %p820_p13, %p819_p12 }
  0x1f   :  { %p822_p1 = pnand %p821_p0, %p815_p11 }
  0x21   :  { %825 = shalt.err (!%p822_p1)
}
  0x22   :  { %24 = dma.hbm_to_vmem [thread:$0]  %s1276_s0, 128, %s22_s21, [#allocation3]  }
  0x23   :  { %s924_s16 = smov [#allocation7]   ;;  %s826_s20 = scalar_lea.hbm %s1278_s2, 4096 }
  0x24   :  { %s40_s17 = sshll.u32 %s924_s16, 4  ;;  %p827_p2 = scmp.ne.s32.totalorder %s1278_s2, %s826_s20  ;;  %s41_s17 = int_to_ptr.vmem [resolvable:$true] %s40_s17 }
  0x25   :  { %p830_p3 = scmp.lt.u32.totalorder %s826_s20, %s1278_s2 }
  0x27   :  { %p832_p4 = pnand %p830_p3, %p827_p2 }
  0x29   :  { %835 = shalt.err (!%p832_p4)
}
  0x2a   :  { %s836_s26 = scalar_lea.vmem %s41_s17, 4096  ;;  %p841_p6 = scmp.lt.s32.totalorder %s41_s17, %s41_s17 }
  0x2b   :  { %p837_p5 = scmp.ne.s32.totalorder %s41_s17, %s836_s26  ;;  %p842_p7 = scmp.lt.s32.totalorder %s836_s26, %s836_s26 }
  0x2d   :  { %p843_p8 = por %p842_p7, %p841_p6 }
  0x2f   :  { %p844_p9 = pnand %p843_p8, %p837_p5 }
  0x31   :  { %847 = shalt.err (!%p844_p9)
}
  0x32   :  { %s925_s0 = smov 128   ;;  %s926_s21 = smov 8  }
  0x33   :  { %46 = dma.hbm_to_vmem [thread:$0]  %s1278_s2, 4096, %s41_s17, [#allocation6], %s925_s0, %s925_s0, %s926_s21  }
  0x34   :  { %914 = dma.done.wait [#allocation3], 128  }
  0x35   :  { %915 = vsyncadd [#allocation3], 4294967168 }
  0x36   :  { %916 = dma.done.wait [#allocation6], 4224  }
  0x37   :  { %917 = vsyncadd [#allocation6], 4294963072  ;;  %v927_v0 = vmov 0.0|0.0   ;;  %vm928_vm0 = vmmov 0   ;;  %v1282_v1 = vmov 0.0   ;;  %v1003_v2 = vld [vmem:[#allocation7 + $0x80] sm:$0xff] }
  0x38   :  { %656 = vmatprep.subr.bf16.mxu1 %v927_v0  ;;  %618 = vmatprep.mubr.msk.f32.mxu1 %vm928_vm0, %v1282_v1  ;;  %v1005_v3 = vld [vmem:[#allocation7 + $0x88] sm:$0xff]  ;;  %v1007_v4 = vld [vmem:[#allocation7 + $0x90] sm:$0xff]  ;;  %v90_v5 = vsub.f32 0.0, %v1003_v2  ;;  %v1011_v7 = vld [vmem:[#allocation7 + $0x98] sm:$0xff]  ;;  %s931_s2 = smov [#allocation9]   ;;  %s932_s30 = smov [#allocation8]  }
  0x39   :  { %v91_v6 = vsub.f32 0.0, %v1005_v3  ;;  %v92_v8 = vsub.f32 0.0, %v1007_v4  ;;  %v1014_v9 = vld [vmem:[#allocation7 + $0xa0] sm:$0xff]  ;;  %v1016_v10 = vld [vmem:[#allocation7 + $0xa8] sm:$0xff]  ;;  %v93_v11 = vsub.f32 0.0, %v1011_v7  ;;  %v1021_v14 = vld [vmem:[#allocation7 + $0xb0] sm:$0xff] }
  0x3a   :  { %v94_v12 = vsub.f32 0.0, %v1014_v9  ;;  %v95_v13 = vsub.f32 0.0, %v1016_v10  ;;  %v1023_v15 = vld [vmem:[#allocation7 + $0xb8] sm:$0xff]  ;;  %v106_v16 = vmul.f32 1.442695, %v90_v5  ;;  %v96_v21 = vsub.f32 0.0, %v1021_v14 }
  0x3b   :  { %v108_v17 = vmul.f32 1.442695, %v91_v6  ;;  %v110_v18 = vmul.f32 1.442695, %v92_v8  ;;  %v112_v19 = vmul.f32 1.442695, %v93_v11 }
  0x3c   :  { %748 = vpow2.f32 %v106_v16  ;;  %v114_v20 = vmul.f32 1.442695, %v94_v12  ;;  %v116_v22 = vmul.f32 1.442695, %v95_v13  ;;  %v97_v23 = vsub.f32 0.0, %v1023_v15  ;;  %v1027_v24 = vld [vmem:[#allocation7 + $0xc0] sm:$0xff] }
  0x3d   :  { %750 = vpow2.f32 %v108_v17  ;;  %v1029_v25 = vld [vmem:[#allocation7 + $0xc8] sm:$0xff]  ;;  %v118_v26 = vmul.f32 1.442695, %v96_v21  ;;  %v98_v27 = vsub.f32 0.0, %v1027_v24  ;;  %v1032_v28 = vld [vmem:[#allocation7 + $0xd0] sm:$0xff]  ;;  %v1035_v31 = vld [vmem:[#allocation7 + $0xd8] sm:$0xff] }
  0x3e   :  { %752 = vpow2.f32 %v110_v18  ;;  %v120_v29 = vmul.f32 1.442695, %v97_v23  ;;  %v99_v30 = vsub.f32 0.0, %v1029_v25  ;;  %v100_v32 = vsub.f32 0.0, %v1032_v28  ;;  %v1039_v35 = vld [vmem:[#allocation7 + $0xe0] sm:$0xff]  ;;  %v1043_v38 = vld [vmem:[#allocation7 + $0xe8] sm:$0xff] }
  0x3f   :  { %754 = vpow2.f32 %v112_v19  ;;  %v122_v33 = vmul.f32 1.442695, %v98_v27  ;;  %v101_v34 = vsub.f32 0.0, %v1035_v31  ;;  %v1041_v36 = vld [vmem:[#allocation7] sm:$0xff]  ;;  %v1045_v40 = vld [vmem:[#allocation7 + $0x8] sm:$0xff]  ;;  %v1047_v41 = vld [vmem:[#allocation7 + $0x10] sm:$0xff] }
  0x40   :  { %756 = vpow2.f32 %v114_v20  ;;  %v124_v37 = vmul.f32 1.442695, %v99_v30  ;;  %v126_v43 = vmul.f32 1.442695, %v100_v32  ;;  %v102_v44 = vsub.f32 0.0, %v1039_v35  ;;  %v1054_v50 = vld [vmem:[#allocation7 + $0xf0] sm:$0xff] }
  0x41   :  { %758 = vpow2.f32 %v116_v22  ;;  %v128_v48 = vmul.f32 1.442695, %v101_v34  ;;  %v103_v49 = vsub.f32 0.0, %v1043_v38  ;;  %v1056_v51 = vld [vmem:[#allocation7 + $0x18] sm:$0xff]  ;;  %v1068_v59 = vld [vmem:[#allocation7 + $0x20] sm:$0xff]  ;;  %v104_v61 = vsub.f32 0.0, %v1054_v50 }
  0x42   :  { %760 = vpow2.f32 %v118_v26  ;;  %v1058_v53 = vld [vmem:[#allocation7 + $0xf8] sm:$0xff]  ;;  %v130_v6 = vmul.f32 1.442695, %v102_v44  ;;  %v1080_v12 = vld [vmem:[#allocation7 + $0x28] sm:$0xff]  ;;  %v1087_v20 = vld [vmem:[#allocation7 + $0x30] sm:$0xff]  ;;  %s489_s29 = sshll.u32 %s931_s2, 4  ;;  %s490_s29 = int_to_ptr.vmem [resolvable:$true] %s489_s29 }
  0x43   :  { %762 = vpow2.f32 %v120_v29  ;;  %v132_v8 = vmul.f32 1.442695, %v103_v49  ;;  %v105_v11 = vsub.f32 0.0, %v1058_v53  ;;  %v134_v27 = vmul.f32 1.442695, %v104_v61  ;;  %v1095_v30 = vld [vmem:[#allocation7 + $0x38] sm:$0xff]  ;;  %p853_p11 = scmp.lt.s32.totalorder %s490_s29, %s490_s29 }
  0x44   :  { %764 = vpow2.f32 %v122_v33  ;;  %s479_s6 = sshll.u32 %s932_s30, 4  ;;  %s848_s7 = scalar_lea.vmem %s490_s29, 128  ;;  %s480_s6 = int_to_ptr.vmem [resolvable:$true] %s479_s6 }
  0x45   :  { %766 = vpow2.f32 %v124_v37  ;;  %v136_v29 = vmul.f32 1.442695, %v105_v11  ;;  %p849_p10 = scmp.ne.s32.totalorder %s490_s29, %s848_s7  ;;  %p854_p12 = scmp.lt.s32.totalorder %s848_s7, %s848_s7 }
  0x46   :  { %v749_v39 = vpop.eup %748  ;;  %768 = vpow2.f32 %v126_v43 }
  0x47   :  { %v751_v42 = vpop.eup %750  ;;  %v1051_v45 = vmul.f32 %v749_v39, %v1041_v36  ;;  %770 = vpow2.f32 %v128_v48  ;;  %v1110_v48 = vld [vmem:[#allocation7 + $0x48] sm:$0xff]  ;;  %p855_p13 = por %p854_p12, %p853_p11 }
  0x48   :  { %v753_v46 = vpop.eup %752  ;;  %v657_v47 = vpack.c.bf16 %v751_v42, %v749_v39  ;;  %v1061_v54 = vmul.f32 %v751_v42, %v1045_v40  ;;  %772 = vpow2.f32 %v130_v6  ;;  %v1102_v42 = vld [vmem:[#allocation7 + $0x40] sm:$0xff] }
  0x49   :  { %v755_v52 = vpop.eup %754  ;;  %v1064_v55 = vmul.f32 %v753_v46, %v1047_v41  ;;  %v175_v56 = vmul.f32 %v1051_v45, %v1041_v36  ;;  %774 = vpow2.f32 %v132_v8  ;;  %v1125_v8 = vld [vmem:[#allocation7 + $0x58] sm:$0xff]  ;;  %p856_p0 = pnand %p855_p13, %p849_p10 }
  0x4a   :  { %v757_v57 = vpop.eup %756  ;;  %658 = vmatpush3.bf16.msra.mxu1 %v657_v47  ;;  %v660_v58 = vpack.c.bf16 %v755_v52, %v753_v46  ;;  %v1073_v62 = vmul.f32 %v755_v52, %v1056_v51  ;;  %v176_v63 = vmul.f32 %v1061_v54, %v1045_v40  ;;  %776 = vpow2.f32 %v134_v27 }
  0x4b   :  { %v759_v60 = vpop.eup %758  ;;  %659 = vmatprep.subr.bf16.mxu1 %v927_v0  ;;  %v177_v5 = vmul.f32 %v1064_v55, %v1047_v41  ;;  %v1083_v13 = vmul.f32 %v757_v57, %v1068_v59  ;;  %778 = vpow2.f32 %v136_v29 }
  0x4c   :  { %v178_v16 = vmul.f32 %v1073_v62, %v1056_v51  ;;  %v191_v17 = vadd.f32 %v176_v63, %v175_v56  ;;  %v761_v18 = vpop.eup %760  ;;  %v663_v19 = vpack.c.bf16 %v759_v60, %v757_v57  ;;  %v1091_v22 = vmul.f32 %v759_v60, %v1080_v12  ;;  %v1117_v60 = vld [vmem:[#allocation7 + $0x50] sm:$0xff] }
  0x4d   :  { %v763_v21 = vpop.eup %762  ;;  %v179_v23 = vmul.f32 %v1083_v13, %v1068_v59  ;;  %v1098_v32 = vmul.f32 %v761_v18, %v1087_v20 }
  0x4e   :  { %661 = vmatpush3.bf16.msra.mxu1 %v660_v58  ;;  %v192_v26 = vadd.f32 %v191_v17, %v177_v5  ;;  %v180_v33 = vmul.f32 %v1091_v22, %v1080_v12  ;;  %v765_v37 = vpop.eup %764  ;;  %v666_v39 = vpack.c.bf16 %v763_v21, %v761_v18  ;;  %v1106_v44 = vmul.f32 %v763_v21, %v1095_v30  ;;  %v1132_v21 = vld [vmem:[#allocation7 + $0x60] sm:$0xff] }
  0x4f   :  { %662 = vmatprep.subr.bf16.mxu1 %v927_v0  ;;  %v767_v43 = vpop.eup %766  ;;  %v181_v46 = vmul.f32 %v1098_v32, %v1087_v20  ;;  %v1113_v49 = vmul.f32 %v765_v37, %v1102_v42  ;;  %1286 = vst [vmem:[#allocation16_spill] sm:$0xff] %v1132_v21 }
  0x50   :  { %v193_v34 = vadd.f32 %v192_v26, %v178_v16  ;;  %v182_v52 = vmul.f32 %v1106_v44, %v1095_v30  ;;  %v769_v57 = vpop.eup %768  ;;  %v669_v58 = vpack.c.bf16 %v767_v43, %v765_v37  ;;  %v1121_v63 = vmul.f32 %v767_v43, %v1110_v48 }
  0x51   :  { %v771_v61 = vpop.eup %770  ;;  %v183_v5 = vmul.f32 %v1113_v49, %v1102_v42  ;;  %v1128_v11 = vmul.f32 %v769_v57, %v1117_v60 }
  0x52   :  { %664 = vmatpush3.bf16.msra.mxu1 %v663_v19  ;;  %v194_v47 = vadd.f32 %v193_v34, %v179_v23  ;;  %v184_v16 = vmul.f32 %v1121_v63, %v1110_v48  ;;  %v773_v18 = vpop.eup %772  ;;  %v672_v19 = vpack.c.bf16 %v771_v61, %v769_v57  ;;  %v1136_v26 = vmul.f32 %v771_v61, %v1125_v8  ;;  %v1150_v61 = vld [vmem:[#allocation7 + $0x78] sm:$0xff] }
  0x53   :  { %665 = vmatprep.subr.bf16.mxu1 %v927_v0  ;;  %v775_v23 = vpop.eup %774  ;;  %v185_v27 = vmul.f32 %v1128_v11, %v1117_v60  ;;  %v150_v34 = vmul.f32 %v773_v18, %v1132_v21 }
  0x54   :  { %v195_v56 = vadd.f32 %v194_v47, %v180_v33  ;;  %v1140_v33 = vld [vmem:[#allocation7 + $0x68] sm:$0xff]  ;;  %v186_v37 = vmul.f32 %v1136_v26, %v1125_v8  ;;  %v777_v43 = vpop.eup %776  ;;  %v1145_v47 = vld [vmem:[#allocation7 + $0x70] sm:$0xff] }
  0x55   :  { %1287 = vst [vmem:[#allocation17_spill] sm:$0xff] %v1140_v33  ;;  %v187_v57 = vmul.f32 %v150_v34, %v1132_v21  ;;  %v681_v21 = vpack.c.bf16 %v1061_v54, %v1051_v45  ;;  %v687_v45 = vpack.c.bf16 %v1091_v22, %v1083_v13  ;;  %v693_v13 = vpack.c.bf16 %v1121_v63, %v1113_v49 }
  0x56   :  { %667 = vmatpush3.bf16.msra.mxu1 %v666_v39  ;;  %v196_v6 = vadd.f32 %v195_v56, %v181_v46  ;;  %v675_v46 = vpack.c.bf16 %v775_v23, %v773_v18  ;;  %v151_v56 = vmul.f32 %v775_v23, %v1140_v33  ;;  %v56_v18 = vld [vmem:[#allocation2] sm:$0xff]  ;;  %v154_v49 = vadd.f32 %v1005_v3, %v1003_v2 }
  0x57   :  { %668 = vmatprep.subr.bf16.mxu1 %v927_v0 }
  0x58   :  { %v197_v17 = vadd.f32 %v196_v6, %v182_v52  ;;  %v779_v52 = vpop.eup %778  ;;  %v188_v6 = vmul.f32 %v151_v56, %v1140_v33  ;;  %v155_v63 = vadd.f32 %v154_v49, %v1007_v4 }
  0x5a   :  { %670 = vmatpush3.bf16.msra.mxu1 %v669_v58  ;;  %v198_v29 = vadd.f32 %v197_v17, %v183_v5  ;;  %v152_v5 = vmul.f32 %v777_v43, %v1145_v47  ;;  %v678_v17 = vpack.c.bf16 %v779_v52, %v777_v43  ;;  %v353_v43 = vlaneseq }
  0x5b   :  { %671 = vmatprep.subr.bf16.mxu1 %v927_v0 }
  0x5c   :  { %v199_v39 = vadd.f32 %v198_v29, %v184_v16  ;;  %v189_v29 = vmul.f32 %v152_v5, %v1145_v47 }
  0x5e   :  { %673 = vmatpush3.bf16.msra.mxu1 %v672_v19  ;;  %v200_v58 = vadd.f32 %v199_v39, %v185_v27  ;;  %v153_v19 = vmul.f32 %v779_v52, %v1150_v61  ;;  %v212_v39 = vmul.f32 %v56_v18, %v56_v18  ;;  %v1288_v52 = vmov 0.0  }
  0x5f   :  { %674 = vmatprep.subr.bf16.mxu1 %v927_v0 }
  0x60   :  { %v201_v16 = vadd.f32 %v200_v58, %v186_v37  ;;  %v190_v1 = vmul.f32 %v153_v19, %v1150_v61 }
  0x62   :  { %676 = vmatpush3.bf16.msra.mxu1 %v675_v46  ;;  %v202_v23 = vadd.f32 %v201_v16, %v187_v57  ;;  %v684_v46 = vpack.c.bf16 %v1073_v62, %v1064_v55  ;;  %v690_v55 = vpack.c.bf16 %v1106_v44, %v1098_v32  ;;  %v696_v16 = vpack.c.bf16 %v1136_v26, %v1128_v11 }
  0x63   :  { %677 = vmatprep.subr.bf16.mxu1 %v927_v0  ;;  %v699_v32 = vpack.c.bf16 %v151_v56, %v150_v34  ;;  %v702_v44 = vpack.c.bf16 %v153_v19, %v152_v5 }
  0x64   :  { %v203_v27 = vadd.f32 %v202_v23, %v188_v6  ;;  %v1166_v6 = vand.u32 127, %v353_v43 }
  0x66   :  { %679 = vmatpush3.bf16.msra.mxu1 %v678_v17  ;;  %v204_v33 = vadd.f32 %v203_v27, %v189_v29  ;;  %vm355_vm1 = vcmp.ge.s32.totalorder %v1166_v6, 16  ;;  %v156_v17 = vadd.f32 %v155_v63, %v1011_v7 }
  0x67   :  { %680 = vmatprep.subr.bf16.mxu1 %v927_v0 }
  0x68   :  { %v205_v37 = vadd.f32 %v204_v33, %v190_v1  ;;  %v157_v11 = vadd.f32 %v156_v17, %v1014_v9  ;;  %v704_v17 = vpack.c.bf16 %v1005_v3, %v1003_v2  ;;  %v714_v2 = vpack.c.bf16 %v1080_v12, %v1068_v59 }
  0x69   :  { %619 = vmatmul.mubr.f32.vlgmr.msra.gmra.mrb[0].mxu1 %v212_v39  ;;  %v716_v3 = vpack.c.bf16 %v1023_v15, %v1021_v14 }
  0x6a   :  { %682 = vmatpush3.bf16.msra.mxu1 %v681_v21  ;;  %653 = vmatprep.mubr.msk.f32.mxu1 %vm928_vm0, %v1288_v52  ;;  %v206_v57 = vrot.slane %v205_v37, 4  ;;  %v356_v21 = vsel %vm355_vm1, 1e+30, %v1288_v52  ;;  %v158_v26 = vadd.f32 %v157_v11, %v1016_v10  ;;  %v706_v11 = vpack.c.bf16 %v1045_v40, %v1041_v36  ;;  %v1289_v36 = vld [vmem:[#allocation16_spill] sm:$0xff] }
  0x6b   :  { %683 = vmatprep.subr.bf16.mxu1 %v927_v0  ;;  %705 = vmatprep.subr.bf16.mxu0 %v704_v17  ;;  %v732_v40 = vpack.c.bf16 %v1058_v53, %v1054_v50 }
  0x6c   :  { %v207_v58 = vadd.f32 %v206_v57, %v205_v37  ;;  %v159_v34 = vadd.f32 %v158_v26, %v1021_v14  ;;  %707 = vmatpush3.bf16.xpose.msra.mxu0 %v706_v11  ;;  %v710_v26 = vpack.c.bf16 %v1056_v51, %v1047_v41  ;;  %v726_v14 = vpack.c.bf16 %v1125_v8, %v1117_v60  ;;  %v57_v8 = vld [vmem:[#allocation5] sm:$0xff] }
  0x6e   :  { %685 = vmatpush3.bf16.msra.mxu1 %v684_v46  ;;  %v208_v1 = vrot.slane %v207_v58, 2  ;;  %v160_v56 = vadd.f32 %v159_v34, %v1023_v15  ;;  %v712_v34 = vpack.c.bf16 %v1016_v10, %v1014_v9  ;;  %v722_v9 = vpack.c.bf16 %v1110_v48, %v1102_v42 }
  0x6f   :  { %686 = vmatprep.subr.bf16.mxu1 %v927_v0  ;;  %v724_v10 = vpack.c.bf16 %v1035_v31, %v1032_v28  ;;  %v728_v15 = vpack.c.bf16 %v1043_v38, %v1039_v35 }
  0x70   :  { %v209_v54 = vadd.f32 %v208_v1, %v207_v58  ;;  %v161_v5 = vadd.f32 %v160_v56, %v1027_v24 }
  0x72   :  { %688 = vmatpush3.bf16.msra.mxu1 %v687_v45  ;;  %v210_v62 = vrot.slane %v209_v54, 1 }
  0x73   :  { %689 = vmatprep.subr.bf16.mxu1 %v927_v0 }
  0x74   :  { %v211_v33 = vadd.f32 %v210_v62, %v209_v54 }
  0x76   :  { %691 = vmatpush3.bf16.msra.mxu1 %v690_v55  ;;  %v359_v22 = vadd.f32 %v356_v21, %v211_v33 }
  0x77   :  { %692 = vmatprep.subr.bf16.mxu1 %v927_v0 }
  0x7a   :  { %694 = vmatpush3.bf16.msra.mxu1 %v693_v13 }
  0x7b   :  { %695 = vmatprep.subr.bf16.mxu1 %v927_v0 }
  0x7e   :  { %697 = vmatpush3.bf16.msra.mxu1 %v696_v16 }
  0x7f   :  { %698 = vmatprep.subr.bf16.mxu1 %v927_v0 }
  0x82   :  { %700 = vmatpush3.bf16.msra.mxu1 %v699_v32 }
  0x83   :  { %701 = vmatprep.subr.bf16.mxu1 %v927_v0  ;;  %v162_v0 = vadd.f32 %v161_v5, %v1029_v25 }
  0x86   :  { %703 = vmatpush3.bf16.msra.mxu1 %v702_v44 }
  0x89   :  { %654 = vmatmul.mubr.f32.vlgmr.msra.gmra.mrb[2].mxu1 %v56_v18  ;;  %v163_v18 = vadd.f32 %v162_v0, %v1032_v28  ;;  %v734_v28 = vpack.c.bf16 %v1150_v61, %v1145_v47 }
  0x8b   :  { %v164_v19 = vadd.f32 %v163_v18, %v1035_v31 }
  0x8d   :  { %v165_v29 = vadd.f32 %v164_v19, %v1039_v35 }
  0x8f   :  { %v166_v39 = vadd.f32 %v165_v29, %v1043_v38 }
  0x91   :  { %v167_v37 = vadd.f32 %v166_v39, %v1054_v50  ;;  %v930_v50 = vmov 1.0  }
  0x93   :  { %v168_v43 = vadd.f32 %v167_v37, %v1058_v53 }
  0x95   :  { %v169_v46 = vrot.slane %v168_v43, 4 }
  0x97   :  { %v170_v52 = vadd.f32 %v169_v46, %v168_v43 }
  0x99   :  { %v171_v57 = vrot.slane %v170_v52, 2 }
  0x9b   :  { %v172_v58 = vadd.f32 %v171_v57, %v170_v52 }
  0x9d   :  { %v173_v45 = vrot.slane %v172_v58, 1 }
  0x9f   :  { %v174_v21 = vadd.f32 %v173_v45, %v172_v58 }
 0x13c   :  { %v279_v23 = vpop.f32.mrb[0].mxu1 }
 0x13d   :  { %v620_v27 = vpop.f32.mrb[1].mxu1 }
 0x15c   :  { %v349_v1 = vpop.f32.mrb[2].mxu1 }
 0x15d   :  { %v357_v54 = vmul.f32 2.0, %v349_v1  ;;  %v655_v55 = vpop.f32.mrb[3].mxu1 }
 0x15f   :  { %v358_v62 = vsub.f32 %v279_v23, %v357_v54 }
 0x161   :  { %v360_v33 = vadd.f32 %v359_v22, %v358_v62  ;;  %v708_v22 = vpack.c.bf16 %v1011_v7, %v1007_v4  ;;  %v718_v4 = vpack.c.bf16 %v1095_v30, %v1087_v20  ;;  %v720_v7 = vpack.c.bf16 %v1029_v25, %v1027_v24  ;;  %v1290_v24 = vld [vmem:[#allocation17_spill] sm:$0xff] }
 0x162   :  { %v730_v25 = vpack.c.bf16 %v1290_v24, %v1289_v36 }
 0x163   :  { %364 = vmin.xlane.f32.xlu0 %v360_v33  ;;  %v361_v13 = vadd.f32 %v360_v33, %v174_v21  ;;  %709 = vmatprep.subr.bf16.mxu0 %v708_v22 }
 0x164   :  { %711 = vmatpush3.bf16.xpose.msra.mxu0 %v710_v26 }
 0x165   :  { %v362_v16 = vmul.f32 -0.5, %v361_v13  ;;  %713 = vmatprep.subr.bf16.mxu0 %v712_v34 }
 0x167   :  { %363 = vst [vmem:[#allocation8] sm:$0xff] %v362_v16 }
 0x16c   :  { %715 = vmatpush3.bf16.xpose.msra.mxu0 %v714_v2 }
 0x16d   :  { %717 = vmatprep.subr.bf16.mxu0 %v716_v3 }
 0x174   :  { %719 = vmatpush3.bf16.xpose.msra.mxu0 %v718_v4 }
 0x175   :  { %721 = vmatprep.subr.bf16.mxu0 %v720_v7 }
 0x17c   :  { %723 = vmatpush3.bf16.xpose.msra.mxu0 %v722_v9 }
 0x17d   :  { %725 = vmatprep.subr.bf16.mxu0 %v724_v10 }
 0x184   :  { %727 = vmatpush3.bf16.xpose.msra.mxu0 %v726_v14 }
 0x185   :  { %729 = vmatprep.subr.bf16.mxu0 %v728_v15 }
 0x18c   :  { %731 = vmatpush3.bf16.xpose.msra.mxu0 %v730_v25 }
 0x18d   :  { %733 = vmatprep.subr.bf16.mxu0 %v732_v40 }
 0x194   :  { %735 = vmatpush3.bf16.xpose.msra.mxu0 %v734_v28 }
 0x1f0   :  { %v1200_v32 = vpop.xlane.xlu0 %364 }
 0x1f1   :  { %vm366_vm2 = vcmp.eq.f32.partialorder %v360_v33, %v1200_v32 }
 0x1f2   :  { %v367_v44 = vsel %vm366_vm2, %v1166_v6, 128 }
 0x1f3   :  { %v369_v49 = vshra.s32 %v367_v44, 16  ;;  %v368_v31 = vand.u32 65535, %v367_v44 }
 0x1f5   :  { %v371_v63 = vcvt.s32.f32 %v369_v49  ;;  %v370_v51 = vcvt.s32.f32 %v368_v31 }
 0x1f7   :  { %372 = vmin.xlane.f32.xlu0 %v371_v63 }
 0x284   :  { %v373_v41 = vpop.xlane.xlu0 %372 }
 0x285   :  { %vm374_vm3 = vcmp.eq.f32.partialorder %v371_v63, %v373_v41  ;;  %v379_v35 = vcvt.f32.s32 %v373_v41 }
 0x286   :  { %v375_v59 = vsel %vm374_vm3, %v370_v51, inf }
 0x287   :  { %376 = vmin.xlane.f32.xlu1 %v375_v59  ;;  %v380_v12 = vshll.u32 %v379_v35, 16 }
 0x314   :  { %v377_v38 = vpop.xlane.xlu1 %376 }
 0x315   :  { %v378_v20 = vcvt.f32.s32 %v377_v38 }
 0x317   :  { %v381_v30 = vadd.s32 %v380_v12, %v378_v20 }
 0x319   :  { %vm382_vm4 = vcmp.eq.s32.totalorder %v1166_v6, %v381_v30 }
 0x31a   :  { %584 = vmatprep.mubr.msk.f32.mxu0 %vm382_vm4, %v930_v50 }
 0x31b   :  { %585 = vmatmul.mubr.msk.f32.vlgmr.msra.gmra.mrb[0].mxu0 %vm382_vm4, %v930_v50 }
 0x3ee   :  { %v451_v53 = vpop.f32.mrb[0].mxu0 }
 0x3ef   :  { %v453_v42 = vpop.f32.mrb[1].mxu0 }
 0x3f0   :  { %v456_v48 = vmul.f32 0.5, %v453_v42  ;;  %462 = vadd.xlane.f32.xlu1 %v453_v42 }
 0x3f2   :  { %v457_v60 = vmul.f32 1.442695, %v456_v48 }
 0x3f4   :  { %780 = vpow2.f32 %v457_v60 }
 0x3fe   :  { %v781_v47 = vpop.eup %780 }
 0x3ff   :  { %v459_v61 = vmul.f32 %v781_v47, %v57_v8 }
 0x401   :  { %v460_v56 = vadd.f32 %v459_v61, %v451_v53 }
 0x403   :  { %461 = vst [vmem:[#allocation9] sm:$0xff] %v460_v56 }
 0x404   :  { %859 = shalt.err (!%p856_p0)
}
 0x405   :  { %s860_s10 = scalar_lea.hbm %s1280_s4, 128 }
 0x406   :  { %p861_p1 = scmp.ne.s32.totalorder %s1280_s4, %s860_s10  ;;  %p864_p2 = scmp.lt.u32.totalorder %s860_s10, %s1280_s4 }
 0x408   :  { %p866_p3 = pnand %p864_p2, %p861_p1 }
 0x40a   :  { %869 = shalt.err (!%p866_p3)
}
 0x40b   :  { %492 = dma.vmem_to_hbm [thread:$0]  %s490_s29, 128, %s1280_s4, [#allocation10]  }
 0x40c   :  { %s870_s16 = scalar_lea.vmem %s480_s6, 128  ;;  %p875_p5 = scmp.lt.s32.totalorder %s480_s6, %s480_s6 }
 0x40d   :  { %p871_p4 = scmp.ne.s32.totalorder %s480_s6, %s870_s16  ;;  %p876_p6 = scmp.lt.s32.totalorder %s870_s16, %s870_s16 }
 0x40f   :  { %p877_p7 = por %p876_p6, %p875_p5 }
 0x411   :  { %p878_p8 = pnand %p877_p7, %p871_p4 }
 0x413   :  { %881 = shalt.err (!%p878_p8)
}
 0x414   :  { %s882_s19 = scalar_lea.hbm %s1279_s3, 128 }
 0x415   :  { %p883_p9 = scmp.ne.s32.totalorder %s1279_s3, %s882_s19  ;;  %p886_p10 = scmp.lt.u32.totalorder %s882_s19, %s1279_s3 }
 0x417   :  { %p888_p11 = pnand %p886_p10, %p883_p9 }
 0x419   :  { %891 = shalt.err (!%p888_p11)
}
 0x41a   :  { %482 = dma.vmem_to_hbm [thread:$0]  %s480_s6, 128, %s1279_s3, [#allocation4]   ;;  %v469_v0 = vcvt.s32.f32 %v381_v30  ;;  %vm466_vm5 = vcmp.eq.s32.totalorder %v1166_v6, 0  ;;  %vm468_vm6 = vcmp.eq.s32.totalorder %v1166_v6, 1 }
 0x41b   :  { %s933_s26 = smov [#allocation11]  }
 0x41c   :  { %s499_s0 = sshll.u32 %s933_s26, 4  ;;  %v470_v29 = vsel %vm468_vm6, %v469_v0, 0.0  ;;  %s500_s0 = int_to_ptr.vmem [resolvable:$true] %s499_s0 }
 0x41d   :  { %s892_s21 = scalar_lea.vmem %s500_s0, 128  ;;  %p897_p13 = scmp.lt.s32.totalorder %s500_s0, %s500_s0 }
 0x41e   :  { %p893_p12 = scmp.ne.s32.totalorder %s500_s0, %s892_s21  ;;  %p898_p0 = scmp.lt.s32.totalorder %s892_s21, %s892_s21 }
 0x420   :  { %p899_p1 = por %p898_p0, %p897_p13 }
 0x422   :  { %p900_p2 = pnand %p899_p1, %p893_p12 }
 0x47d   :  { %v463_v5 = vpop.xlane.xlu1 %462 }
 0x47e   :  { %v464_v18 = vadd.f32 %v463_v5, %v1200_v32 }
 0x480   :  { %v465_v19 = vmul.f32 0.5, %v464_v18 }
 0x482   :  { %v467_v23 = vsel %vm466_vm5, %v465_v19, 0.0 }
 0x483   :  { %v471_v27 = vadd.f32 %v470_v29, %v467_v23 }
 0x485   :  { %472 = vst [vmem:[#allocation11] sm:$0xff] %v471_v27 }
 0x486   :  { %903 = shalt.err (!%p900_p2)
}
 0x487   :  { %s904_s28 = scalar_lea.hbm %s1281_s5, 128 }
 0x488   :  { %p905_p3 = scmp.ne.s32.totalorder %s1281_s5, %s904_s28  ;;  %p908_p4 = scmp.lt.u32.totalorder %s904_s28, %s1281_s5 }
 0x48a   :  { %p910_p5 = pnand %p908_p4, %p905_p3 }
 0x48c   :  { %913 = shalt.err (!%p910_p5)
}
 0x48d   :  { %502 = dma.vmem_to_hbm [thread:$0]  %s500_s0, 128, %s1281_s5, [#allocation10]  }
 0x48e   :  { %918 = dma.done.wait [#allocation4], 128  }
 0x48f   :  { %919 = vsyncadd [#allocation4], 4294967168 }
 0x490   :  { %920 = dma.done.wait [#allocation10], 256  }
 0x491   :  { %921 = vsyncadd [#allocation10], 4294967040 }
 0x492   :  { %512 = vsyncpa [#allocation3], 1 }
 0x493   :  { %513 = vsyncpa [#allocation6], 1 }
 0x494   :  { %514 = vsyncpa [#allocation4], 1 }
 0x495   :  { %515 = vsyncpa [#allocation10], 1 }

</bundles_post_ra>
